<compile_context>
chip_gen: v5e
topology: v5e:2x2
jax: 0.10.0
libtpu: 0.0.40
codegen_flags: <defaults>
</compile_context>

<pallas_src>
import math

import jax
import jax.numpy as jnp
from jax.experimental import pallas as pl
from jax.experimental.pallas import tpu as pltpu

KH, KW = 19, 64          # conv kernel (height, width); stride = (1, KW)
NP = (KH + 1) // 2       # 10 h-pairs, each packed to K = 2*KW = 128 (last pair zero-padded)


def patch_embed_kernel(x_ref, w_ref, add_ref, o_ref):
    # x_ref   : (b_tile, KH, m_tile, KW) f32   input slab (streamed f32, no wrapper cast)
    # w_ref   : (NP, 2*KW, E)            bf16  conv weight, h-pairs packed along K
    # add_ref : (m_tile, E)              f32   conv bias + positions[1+m0 : 1+m0+m_tile]
    # o_ref   : (b_tile, m_tile, E)      f32   patch-token rows for this (b, m) tile
    b_tile, m_tile, E = o_ref.shape
    M = b_tile * m_tile
    acc = jnp.zeros((M, E), jnp.float32)
    # Unrolled at trace time: 10 MXU matmuls at native K=128, f32 accumulate.
    # Keep the `acc = acc + dot(...)` chain: v7x MRB accumulates in place.
    for p in range(NP):
        h0 = 2 * p
        h1 = min(2 * p + 1, KH - 1)   # last pair duplicates row 18; its weight half is zero
        lhs = jnp.concatenate(
            [x_ref[:, h0].reshape(M, KW), x_ref[:, h1].reshape(M, KW)], axis=-1
        ).astype(jnp.bfloat16)        # in-kernel cast: MXU-native, no extra HBM traffic
        acc = acc + jnp.dot(lhs, w_ref[p], preferred_element_type=jnp.float32)
    o_ref[...] = (acc.reshape(b_tile, m_tile, E) + add_ref[...][None, :, :]).astype(o_ref.dtype)


def _largest_divisor_tile(n, cap, align):
    t = (cap // align) * align
    while t >= align:
        if n % t == 0:
            return t
        t -= align
    return None


def _pick_tiles(B, n, m_cap=512, m_target=256):
    """m_tile = largest divisor of n <= m_cap (prefer multiples of 16, then 8).
    Fold batches (b_tile) only when the per-step row count is small, keeping >= 2
    total grid steps so both v7x TensorCores get work."""
    if n <= m_cap:
        m_tile = n
    else:
        m_tile = (_largest_divisor_tile(n, m_cap, 16)
                  or _largest_divisor_tile(n, m_cap, 8)
                  or n)  # TODO(synk): awkward n -> one large block; fine for S % 64 == 0 inputs
    n_tiles = n // m_tile
    b_tile = 1
    if n_tiles == 1 and m_tile < m_target and B > 1:
        for cand in range(B, 0, -1):
            if B % cand == 0 and cand * m_tile <= 1024 and (B // cand) >= 2:
                b_tile = cand
                break
    return b_tile, m_tile


def patch_embedding(x, conv_w, conv_b, cls_token, positions):
    """x: (B, 1, 19, S) f32 with S % 64 == 0. Returns (B, S//64 + 1, E) f32."""
    B, C, H, S = x.shape
    assert C == 1 and H == KH and S % KW == 0
    n = S // KW
    E = conv_w.shape[0]

    # Free reshape (row-major split of the last dim, no HBM pass); x stays f32.
    x_r = x.reshape(B, KH, n, KW)

    # Tiny weight re-layout (once): (E,1,KH,KW) -> pad KH to 2*NP -> (NP, 2*KW, E) bf16.
    w_r = conv_w.reshape(E, KH, KW)
    w_pad = jnp.concatenate([w_r, jnp.zeros((E, 2 * NP - KH, KW), w_r.dtype)], axis=1)
    w_packed = w_pad.reshape(E, NP, 2 * KW).transpose(1, 2, 0).astype(jnp.bfloat16)

    # Fold bias + per-patch positional rows (f32); cls row handled once in glue.
    add_table = (positions[1:] + conv_b[None, :]).astype(jnp.float32)          # (n, E)
    cls_row = (cls_token.reshape(1, E) + positions[0:1]).astype(jnp.float32)   # (1, E)

    b_tile, m_tile = _pick_tiles(B, n)
    grid = (B // b_tile, n // m_tile)

    proj = pl.pallas_call(
        patch_embed_kernel,
        out_shape=jax.ShapeDtypeStruct((B, n, E), jnp.float32),
        grid_spec=pltpu.PrefetchScalarGridSpec(
            num_scalar_prefetch=0,
            grid=grid,
            in_specs=[
                # f32 x slab for (batch-tile b, m-tile m)
                pl.BlockSpec((b_tile, KH, m_tile, KW), lambda b, m: (b, 0, m, 0)),
                # packed conv weight, shared across all grid steps
                pl.BlockSpec((NP, 2 * KW, E), lambda b, m: (0, 0, 0)),
                # fused bias + positional rows for this m-tile
                pl.BlockSpec((m_tile, E), lambda b, m: (m, 0)),
            ],
            out_specs=pl.BlockSpec((b_tile, m_tile, E), lambda b, m: (b, m, 0)),
        ),
        compiler_params=pltpu.CompilerParams(
            dimension_semantics=("parallel", "parallel"),
        ),
    )(x_r, w_packed, add_table)

    # Batch-invariant cls row; prepend in XLA glue (cheap at small E).
    cls = jnp.broadcast_to(cls_row[None, :, :], (B, 1, E))
    return jnp.concatenate([cls, proj], axis=1)


if __name__ == "__main__":
    key = jax.random.PRNGKey(0)
    k1, k2, k3, k4, k5 = jax.random.split(key, 5)

    # Small shapes consistent with the module: emb_size=32, S=512 -> 8 patches + cls.
    B, S, E = 2, 512, 32
    x = jax.random.normal(k1, (B, 1, KH, S), jnp.float32)

    # Deterministic parameter init (Conv2d default-style uniform for w/b, randn for cls/pos).
    fan_in = 1 * KH * KW
    bound = 1.0 / math.sqrt(fan_in)
    conv_w = jax.random.uniform(k2, (E, 1, KH, KW), jnp.float32, -bound, bound)
    conv_b = jax.random.uniform(k3, (E,), jnp.float32, -bound, bound)
    cls_token = jax.random.normal(k4, (1, 1, E), jnp.float32)
    positions = jax.random.normal(k5, (S // KW + 1, E), jnp.float32)

    out = patch_embedding(x, conv_w, conv_b, cls_token, positions)
    out = jax.block_until_ready(out)

    # Independent f32 reference via lax.conv to validate semantics
    # (also verifies the zero-padded 10th h-pair contributes exactly 0).
    ref_conv = jax.lax.conv_general_dilated(
        x, conv_w, window_strides=(1, KW), padding="VALID",
        dimension_numbers=("NCHW", "OIHW", "NCHW"),
    )                                                        # (B, E, 1, n)
    ref = ref_conv[:, :, 0, :].transpose(0, 2, 1) + conv_b   # (B, n, E)
    ref = jnp.concatenate(
        [jnp.broadcast_to(cls_token.reshape(1, 1, E), (B, 1, E)), ref], axis=1
    ) + positions

    assert out.shape == (B, S // KW + 1, E)
    # MXU operands are bf16 (f32 accumulate) -> relaxed tolerance vs f32 reference.
    assert jnp.allclose(out, ref, atol=3e-2, rtol=3e-2)
    print("KERNEL_OK")
</pallas_src>

<mosaic_0001>
module attributes {stable_mosaic.version = 11 : i64} {
  func.func @patch_embed_kernel(%arg0: i32, %arg1: i32, %arg2: memref<1x19x8x64xf32, #tpu.memory_space<vmem>>, %arg3: memref<10x128x32xbf16, #tpu.memory_space<vmem>>, %arg4: memref<8x32xf32, #tpu.memory_space<vmem>>, %arg5: memref<1x8x32xf32, #tpu.memory_space<vmem>>) attributes {dimension_semantics = [#tpu.dimension_semantics<parallel>, #tpu.dimension_semantics<parallel>], iteration_bounds = array<i64: 2, 1>, scalar_prefetch = 0 : i64, scratch_operands = 0 : i64, tpu.core_type = #tpu.core_type<tc>, window_params = [{transform_indices = @transform_0, window_bounds = array<i64: 1, 19, 8, 64>}, {pipeline_mode = #tpu.pipeline_mode<synchronous>, transform_indices = @transform_1, window_bounds = array<i64: 10, 128, 32>}, {transform_indices = @transform_2, window_bounds = array<i64: 8, 32>}, {transform_indices = @transform_3, window_bounds = array<i64: 1, 8, 32>}]} {
    %cst = arith.constant 0.000000e+00 : f32
    %0 = vector.broadcast %cst : f32 to vector<8x32xf32>
    %c0 = arith.constant 0 : index
    %c0_0 = arith.constant 0 : index
    %c0_1 = arith.constant 0 : index
    %c0_2 = arith.constant 0 : index
    %1 = vector.load %arg2[%c0, %c0_0, %c0_1, %c0_2] : memref<1x19x8x64xf32, #tpu.memory_space<vmem>>, vector<1x1x8x64xf32>
    %2 = vector.shape_cast %1 : vector<1x1x8x64xf32> to vector<1x8x64xf32>
    %3 = vector.shape_cast %2 : vector<1x8x64xf32> to vector<8x64xf32>
    %c0_3 = arith.constant 0 : index
    %c1 = arith.constant 1 : index
    %c0_4 = arith.constant 0 : index
    %c0_5 = arith.constant 0 : index
    %4 = vector.load %arg2[%c0_3, %c1, %c0_4, %c0_5] : memref<1x19x8x64xf32, #tpu.memory_space<vmem>>, vector<1x1x8x64xf32>
    %5 = vector.shape_cast %4 : vector<1x1x8x64xf32> to vector<1x8x64xf32>
    %6 = vector.shape_cast %5 : vector<1x8x64xf32> to vector<8x64xf32>
    %7 = tpu.concatenate %3, %6 in 1 : vector<8x64xf32>, vector<8x64xf32> -> vector<8x128xf32>
    %8 = arith.truncf %7 : vector<8x128xf32> to vector<8x128xbf16>
    %c0_6 = arith.constant 0 : index
    %c0_7 = arith.constant 0 : index
    %c0_8 = arith.constant 0 : index
    %9 = vector.load %arg3[%c0_6, %c0_7, %c0_8] : memref<10x128x32xbf16, #tpu.memory_space<vmem>>, vector<1x128x32xbf16>
    %10 = vector.shape_cast %9 : vector<1x128x32xbf16> to vector<128x32xbf16>
    %cst_9 = arith.constant dense<0.000000e+00> : vector<8x32xf32>
    %11 = tpu.matmul %8, %10, %cst_9 {dimension_numbers = #tpu.dot_dimension_numbers<[1], [0], [0], [1], [0, 0, 1, 1], [], []>} : vector<8x128xbf16>, vector<128x32xbf16>, vector<8x32xf32> -> vector<8x32xf32>
    %12 = arith.addf %0, %11 : vector<8x32xf32>
    %c0_10 = arith.constant 0 : index
    %c2 = arith.constant 2 : index
    %c0_11 = arith.constant 0 : index
    %c0_12 = arith.constant 0 : index
    %13 = vector.load %arg2[%c0_10, %c2, %c0_11, %c0_12] : memref<1x19x8x64xf32, #tpu.memory_space<vmem>>, vector<1x1x8x64xf32>
    %14 = vector.shape_cast %13 : vector<1x1x8x64xf32> to vector<1x8x64xf32>
    %15 = vector.shape_cast %14 : vector<1x8x64xf32> to vector<8x64xf32>
    %c0_13 = arith.constant 0 : index
    %c3 = arith.constant 3 : index
    %c0_14 = arith.constant 0 : index
    %c0_15 = arith.constant 0 : index
    %16 = vector.load %arg2[%c0_13, %c3, %c0_14, %c0_15] : memref<1x19x8x64xf32, #tpu.memory_space<vmem>>, vector<1x1x8x64xf32>
    %17 = vector.shape_cast %16 : vector<1x1x8x64xf32> to vector<1x8x64xf32>
    %18 = vector.shape_cast %17 : vector<1x8x64xf32> to vector<8x64xf32>
    %19 = tpu.concatenate %15, %18 in 1 : vector<8x64xf32>, vector<8x64xf32> -> vector<8x128xf32>
    %20 = arith.truncf %19 : vector<8x128xf32> to vector<8x128xbf16>
    %c1_16 = arith.constant 1 : index
    %c0_17 = arith.constant 0 : index
    %c0_18 = arith.constant 0 : index
    %21 = vector.load %arg3[%c1_16, %c0_17, %c0_18] : memref<10x128x32xbf16, #tpu.memory_space<vmem>>, vector<1x128x32xbf16>
    %22 = vector.shape_cast %21 : vector<1x128x32xbf16> to vector<128x32xbf16>
    %cst_19 = arith.constant dense<0.000000e+00> : vector<8x32xf32>
    %23 = tpu.matmul %20, %22, %cst_19 {dimension_numbers = #tpu.dot_dimension_numbers<[1], [0], [0], [1], [0, 0, 1, 1], [], []>} : vector<8x128xbf16>, vector<128x32xbf16>, vector<8x32xf32> -> vector<8x32xf32>
    %24 = arith.addf %12, %23 : vector<8x32xf32>
    %c0_20 = arith.constant 0 : index
    %c4 = arith.constant 4 : index
    %c0_21 = arith.constant 0 : index
    %c0_22 = arith.constant 0 : index
    %25 = vector.load %arg2[%c0_20, %c4, %c0_21, %c0_22] : memref<1x19x8x64xf32, #tpu.memory_space<vmem>>, vector<1x1x8x64xf32>
    %26 = vector.shape_cast %25 : vector<1x1x8x64xf32> to vector<1x8x64xf32>
    %27 = vector.shape_cast %26 : vector<1x8x64xf32> to vector<8x64xf32>
    %c0_23 = arith.constant 0 : index
    %c5 = arith.constant 5 : index
    %c0_24 = arith.constant 0 : index
    %c0_25 = arith.constant 0 : index
    %28 = vector.load %arg2[%c0_23, %c5, %c0_24, %c0_25] : memref<1x19x8x64xf32, #tpu.memory_space<vmem>>, vector<1x1x8x64xf32>
    %29 = vector.shape_cast %28 : vector<1x1x8x64xf32> to vector<1x8x64xf32>
    %30 = vector.shape_cast %29 : vector<1x8x64xf32> to vector<8x64xf32>
    %31 = tpu.concatenate %27, %30 in 1 : vector<8x64xf32>, vector<8x64xf32> -> vector<8x128xf32>
    %32 = arith.truncf %31 : vector<8x128xf32> to vector<8x128xbf16>
    %c2_26 = arith.constant 2 : index
    %c0_27 = arith.constant 0 : index
    %c0_28 = arith.constant 0 : index
    %33 = vector.load %arg3[%c2_26, %c0_27, %c0_28] : memref<10x128x32xbf16, #tpu.memory_space<vmem>>, vector<1x128x32xbf16>
    %34 = vector.shape_cast %33 : vector<1x128x32xbf16> to vector<128x32xbf16>
    %cst_29 = arith.constant dense<0.000000e+00> : vector<8x32xf32>
    %35 = tpu.matmul %32, %34, %cst_29 {dimension_numbers = #tpu.dot_dimension_numbers<[1], [0], [0], [1], [0, 0, 1, 1], [], []>} : vector<8x128xbf16>, vector<128x32xbf16>, vector<8x32xf32> -> vector<8x32xf32>
    %36 = arith.addf %24, %35 : vector<8x32xf32>
    %c0_30 = arith.constant 0 : index
    %c6 = arith.constant 6 : index
    %c0_31 = arith.constant 0 : index
    %c0_32 = arith.constant 0 : index
    %37 = vector.load %arg2[%c0_30, %c6, %c0_31, %c0_32] : memref<1x19x8x64xf32, #tpu.memory_space<vmem>>, vector<1x1x8x64xf32>
    %38 = vector.shape_cast %37 : vector<1x1x8x64xf32> to vector<1x8x64xf32>
    %39 = vector.shape_cast %38 : vector<1x8x64xf32> to vector<8x64xf32>
    %c0_33 = arith.constant 0 : index
    %c7 = arith.constant 7 : index
    %c0_34 = arith.constant 0 : index
    %c0_35 = arith.constant 0 : index
    %40 = vector.load %arg2[%c0_33, %c7, %c0_34, %c0_35] : memref<1x19x8x64xf32, #tpu.memory_space<vmem>>, vector<1x1x8x64xf32>
    %41 = vector.shape_cast %40 : vector<1x1x8x64xf32> to vector<1x8x64xf32>
    %42 = vector.shape_cast %41 : vector<1x8x64xf32> to vector<8x64xf32>
    %43 = tpu.concatenate %39, %42 in 1 : vector<8x64xf32>, vector<8x64xf32> -> vector<8x128xf32>
    %44 = arith.truncf %43 : vector<8x128xf32> to vector<8x128xbf16>
    %c3_36 = arith.constant 3 : index
    %c0_37 = arith.constant 0 : index
    %c0_38 = arith.constant 0 : index
    %45 = vector.load %arg3[%c3_36, %c0_37, %c0_38] : memref<10x128x32xbf16, #tpu.memory_space<vmem>>, vector<1x128x32xbf16>
    %46 = vector.shape_cast %45 : vector<1x128x32xbf16> to vector<128x32xbf16>
    %cst_39 = arith.constant dense<0.000000e+00> : vector<8x32xf32>
    %47 = tpu.matmul %44, %46, %cst_39 {dimension_numbers = #tpu.dot_dimension_numbers<[1], [0], [0], [1], [0, 0, 1, 1], [], []>} : vector<8x128xbf16>, vector<128x32xbf16>, vector<8x32xf32> -> vector<8x32xf32>
    %48 = arith.addf %36, %47 : vector<8x32xf32>
    %c0_40 = arith.constant 0 : index
    %c8 = arith.constant 8 : index
    %c0_41 = arith.constant 0 : index
    %c0_42 = arith.constant 0 : index
    %49 = vector.load %arg2[%c0_40, %c8, %c0_41, %c0_42] : memref<1x19x8x64xf32, #tpu.memory_space<vmem>>, vector<1x1x8x64xf32>
    %50 = vector.shape_cast %49 : vector<1x1x8x64xf32> to vector<1x8x64xf32>
    %51 = vector.shape_cast %50 : vector<1x8x64xf32> to vector<8x64xf32>
    %c0_43 = arith.constant 0 : index
    %c9 = arith.constant 9 : index
    %c0_44 = arith.constant 0 : index
    %c0_45 = arith.constant 0 : index
    %52 = vector.load %arg2[%c0_43, %c9, %c0_44, %c0_45] : memref<1x19x8x64xf32, #tpu.memory_space<vmem>>, vector<1x1x8x64xf32>
    %53 = vector.shape_cast %52 : vector<1x1x8x64xf32> to vector<1x8x64xf32>
    %54 = vector.shape_cast %53 : vector<1x8x64xf32> to vector<8x64xf32>
    %55 = tpu.concatenate %51, %54 in 1 : vector<8x64xf32>, vector<8x64xf32> -> vector<8x128xf32>
    %56 = arith.truncf %55 : vector<8x128xf32> to vector<8x128xbf16>
    %c4_46 = arith.constant 4 : index
    %c0_47 = arith.constant 0 : index
    %c0_48 = arith.constant 0 : index
    %57 = vector.load %arg3[%c4_46, %c0_47, %c0_48] : memref<10x128x32xbf16, #tpu.memory_space<vmem>>, vector<1x128x32xbf16>
    %58 = vector.shape_cast %57 : vector<1x128x32xbf16> to vector<128x32xbf16>
    %cst_49 = arith.constant dense<0.000000e+00> : vector<8x32xf32>
    %59 = tpu.matmul %56, %58, %cst_49 {dimension_numbers = #tpu.dot_dimension_numbers<[1], [0], [0], [1], [0, 0, 1, 1], [], []>} : vector<8x128xbf16>, vector<128x32xbf16>, vector<8x32xf32> -> vector<8x32xf32>
    %60 = arith.addf %48, %59 : vector<8x32xf32>
    %c0_50 = arith.constant 0 : index
    %c10 = arith.constant 10 : index
    %c0_51 = arith.constant 0 : index
    %c0_52 = arith.constant 0 : index
    %61 = vector.load %arg2[%c0_50, %c10, %c0_51, %c0_52] : memref<1x19x8x64xf32, #tpu.memory_space<vmem>>, vector<1x1x8x64xf32>
    %62 = vector.shape_cast %61 : vector<1x1x8x64xf32> to vector<1x8x64xf32>
    %63 = vector.shape_cast %62 : vector<1x8x64xf32> to vector<8x64xf32>
    %c0_53 = arith.constant 0 : index
    %c11 = arith.constant 11 : index
    %c0_54 = arith.constant 0 : index
    %c0_55 = arith.constant 0 : index
    %64 = vector.load %arg2[%c0_53, %c11, %c0_54, %c0_55] : memref<1x19x8x64xf32, #tpu.memory_space<vmem>>, vector<1x1x8x64xf32>
    %65 = vector.shape_cast %64 : vector<1x1x8x64xf32> to vector<1x8x64xf32>
    %66 = vector.shape_cast %65 : vector<1x8x64xf32> to vector<8x64xf32>
    %67 = tpu.concatenate %63, %66 in 1 : vector<8x64xf32>, vector<8x64xf32> -> vector<8x128xf32>
    %68 = arith.truncf %67 : vector<8x128xf32> to vector<8x128xbf16>
    %c5_56 = arith.constant 5 : index
    %c0_57 = arith.constant 0 : index
    %c0_58 = arith.constant 0 : index
    %69 = vector.load %arg3[%c5_56, %c0_57, %c0_58] : memref<10x128x32xbf16, #tpu.memory_space<vmem>>, vector<1x128x32xbf16>
    %70 = vector.shape_cast %69 : vector<1x128x32xbf16> to vector<128x32xbf16>
    %cst_59 = arith.constant dense<0.000000e+00> : vector<8x32xf32>
    %71 = tpu.matmul %68, %70, %cst_59 {dimension_numbers = #tpu.dot_dimension_numbers<[1], [0], [0], [1], [0, 0, 1, 1], [], []>} : vector<8x128xbf16>, vector<128x32xbf16>, vector<8x32xf32> -> vector<8x32xf32>
    %72 = arith.addf %60, %71 : vector<8x32xf32>
    %c0_60 = arith.constant 0 : index
    %c12 = arith.constant 12 : index
    %c0_61 = arith.constant 0 : index
    %c0_62 = arith.constant 0 : index
    %73 = vector.load %arg2[%c0_60, %c12, %c0_61, %c0_62] : memref<1x19x8x64xf32, #tpu.memory_space<vmem>>, vector<1x1x8x64xf32>
    %74 = vector.shape_cast %73 : vector<1x1x8x64xf32> to vector<1x8x64xf32>
    %75 = vector.shape_cast %74 : vector<1x8x64xf32> to vector<8x64xf32>
    %c0_63 = arith.constant 0 : index
    %c13 = arith.constant 13 : index
    %c0_64 = arith.constant 0 : index
    %c0_65 = arith.constant 0 : index
    %76 = vector.load %arg2[%c0_63, %c13, %c0_64, %c0_65] : memref<1x19x8x64xf32, #tpu.memory_space<vmem>>, vector<1x1x8x64xf32>
    %77 = vector.shape_cast %76 : vector<1x1x8x64xf32> to vector<1x8x64xf32>
    %78 = vector.shape_cast %77 : vector<1x8x64xf32> to vector<8x64xf32>
    %79 = tpu.concatenate %75, %78 in 1 : vector<8x64xf32>, vector<8x64xf32> -> vector<8x128xf32>
    %80 = arith.truncf %79 : vector<8x128xf32> to vector<8x128xbf16>
    %c6_66 = arith.constant 6 : index
    %c0_67 = arith.constant 0 : index
    %c0_68 = arith.constant 0 : index
    %81 = vector.load %arg3[%c6_66, %c0_67, %c0_68] : memref<10x128x32xbf16, #tpu.memory_space<vmem>>, vector<1x128x32xbf16>
    %82 = vector.shape_cast %81 : vector<1x128x32xbf16> to vector<128x32xbf16>
    %cst_69 = arith.constant dense<0.000000e+00> : vector<8x32xf32>
    %83 = tpu.matmul %80, %82, %cst_69 {dimension_numbers = #tpu.dot_dimension_numbers<[1], [0], [0], [1], [0, 0, 1, 1], [], []>} : vector<8x128xbf16>, vector<128x32xbf16>, vector<8x32xf32> -> vector<8x32xf32>
    %84 = arith.addf %72, %83 : vector<8x32xf32>
    %c0_70 = arith.constant 0 : index
    %c14 = arith.constant 14 : index
    %c0_71 = arith.constant 0 : index
    %c0_72 = arith.constant 0 : index
    %85 = vector.load %arg2[%c0_70, %c14, %c0_71, %c0_72] : memref<1x19x8x64xf32, #tpu.memory_space<vmem>>, vector<1x1x8x64xf32>
    %86 = vector.shape_cast %85 : vector<1x1x8x64xf32> to vector<1x8x64xf32>
    %87 = vector.shape_cast %86 : vector<1x8x64xf32> to vector<8x64xf32>
    %c0_73 = arith.constant 0 : index
    %c15 = arith.constant 15 : index
    %c0_74 = arith.constant 0 : index
    %c0_75 = arith.constant 0 : index
    %88 = vector.load %arg2[%c0_73, %c15, %c0_74, %c0_75] : memref<1x19x8x64xf32, #tpu.memory_space<vmem>>, vector<1x1x8x64xf32>
    %89 = vector.shape_cast %88 : vector<1x1x8x64xf32> to vector<1x8x64xf32>
    %90 = vector.shape_cast %89 : vector<1x8x64xf32> to vector<8x64xf32>
    %91 = tpu.concatenate %87, %90 in 1 : vector<8x64xf32>, vector<8x64xf32> -> vector<8x128xf32>
    %92 = arith.truncf %91 : vector<8x128xf32> to vector<8x128xbf16>
    %c7_76 = arith.constant 7 : index
    %c0_77 = arith.constant 0 : index
    %c0_78 = arith.constant 0 : index
    %93 = vector.load %arg3[%c7_76, %c0_77, %c0_78] : memref<10x128x32xbf16, #tpu.memory_space<vmem>>, vector<1x128x32xbf16>
    %94 = vector.shape_cast %93 : vector<1x128x32xbf16> to vector<128x32xbf16>
    %cst_79 = arith.constant dense<0.000000e+00> : vector<8x32xf32>
    %95 = tpu.matmul %92, %94, %cst_79 {dimension_numbers = #tpu.dot_dimension_numbers<[1], [0], [0], [1], [0, 0, 1, 1], [], []>} : vector<8x128xbf16>, vector<128x32xbf16>, vector<8x32xf32> -> vector<8x32xf32>
    %96 = arith.addf %84, %95 : vector<8x32xf32>
    %c0_80 = arith.constant 0 : index
    %c16 = arith.constant 16 : index
    %c0_81 = arith.constant 0 : index
    %c0_82 = arith.constant 0 : index
    %97 = vector.load %arg2[%c0_80, %c16, %c0_81, %c0_82] : memref<1x19x8x64xf32, #tpu.memory_space<vmem>>, vector<1x1x8x64xf32>
    %98 = vector.shape_cast %97 : vector<1x1x8x64xf32> to vector<1x8x64xf32>
    %99 = vector.shape_cast %98 : vector<1x8x64xf32> to vector<8x64xf32>
    %c0_83 = arith.constant 0 : index
    %c17 = arith.constant 17 : index
    %c0_84 = arith.constant 0 : index
    %c0_85 = arith.constant 0 : index
    %100 = vector.load %arg2[%c0_83, %c17, %c0_84, %c0_85] : memref<1x19x8x64xf32, #tpu.memory_space<vmem>>, vector<1x1x8x64xf32>
    %101 = vector.shape_cast %100 : vector<1x1x8x64xf32> to vector<1x8x64xf32>
    %102 = vector.shape_cast %101 : vector<1x8x64xf32> to vector<8x64xf32>
    %103 = tpu.concatenate %99, %102 in 1 : vector<8x64xf32>, vector<8x64xf32> -> vector<8x128xf32>
    %104 = arith.truncf %103 : vector<8x128xf32> to vector<8x128xbf16>
    %c8_86 = arith.constant 8 : index
    %c0_87 = arith.constant 0 : index
    %c0_88 = arith.constant 0 : index
    %105 = vector.load %arg3[%c8_86, %c0_87, %c0_88] : memref<10x128x32xbf16, #tpu.memory_space<vmem>>, vector<1x128x32xbf16>
    %106 = vector.shape_cast %105 : vector<1x128x32xbf16> to vector<128x32xbf16>
    %cst_89 = arith.constant dense<0.000000e+00> : vector<8x32xf32>
    %107 = tpu.matmul %104, %106, %cst_89 {dimension_numbers = #tpu.dot_dimension_numbers<[1], [0], [0], [1], [0, 0, 1, 1], [], []>} : vector<8x128xbf16>, vector<128x32xbf16>, vector<8x32xf32> -> vector<8x32xf32>
    %108 = arith.addf %96, %107 : vector<8x32xf32>
    %c0_90 = arith.constant 0 : index
    %c18 = arith.constant 18 : index
    %c0_91 = arith.constant 0 : index
    %c0_92 = arith.constant 0 : index
    %109 = vector.load %arg2[%c0_90, %c18, %c0_91, %c0_92] : memref<1x19x8x64xf32, #tpu.memory_space<vmem>>, vector<1x1x8x64xf32>
    %110 = vector.shape_cast %109 : vector<1x1x8x64xf32> to vector<1x8x64xf32>
    %111 = vector.shape_cast %110 : vector<1x8x64xf32> to vector<8x64xf32>
    %c0_93 = arith.constant 0 : index
    %c18_94 = arith.constant 18 : index
    %c0_95 = arith.constant 0 : index
    %c0_96 = arith.constant 0 : index
    %112 = vector.load %arg2[%c0_93, %c18_94, %c0_95, %c0_96] : memref<1x19x8x64xf32, #tpu.memory_space<vmem>>, vector<1x1x8x64xf32>
    %113 = vector.shape_cast %112 : vector<1x1x8x64xf32> to vector<1x8x64xf32>
    %114 = vector.shape_cast %113 : vector<1x8x64xf32> to vector<8x64xf32>
    %115 = tpu.concatenate %111, %114 in 1 : vector<8x64xf32>, vector<8x64xf32> -> vector<8x128xf32>
    %116 = arith.truncf %115 : vector<8x128xf32> to vector<8x128xbf16>
    %c9_97 = arith.constant 9 : index
    %c0_98 = arith.constant 0 : index
    %c0_99 = arith.constant 0 : index
    %117 = vector.load %arg3[%c9_97, %c0_98, %c0_99] : memref<10x128x32xbf16, #tpu.memory_space<vmem>>, vector<1x128x32xbf16>
    %118 = vector.shape_cast %117 : vector<1x128x32xbf16> to vector<128x32xbf16>
    %cst_100 = arith.constant dense<0.000000e+00> : vector<8x32xf32>
    %119 = tpu.matmul %116, %118, %cst_100 {dimension_numbers = #tpu.dot_dimension_numbers<[1], [0], [0], [1], [0, 0, 1, 1], [], []>} : vector<8x128xbf16>, vector<128x32xbf16>, vector<8x32xf32> -> vector<8x32xf32>
    %120 = arith.addf %108, %119 : vector<8x32xf32>
    %121 = vector.shape_cast %120 : vector<8x32xf32> to vector<1x8x32xf32>
    %c0_101 = arith.constant 0 : index
    %c0_102 = arith.constant 0 : index
    %122 = vector.load %arg4[%c0_101, %c0_102] : memref<8x32xf32, #tpu.memory_space<vmem>>, vector<8x32xf32>
    %123 = vector.shape_cast %122 : vector<8x32xf32> to vector<1x8x32xf32>
    %124 = arith.addf %121, %123 : vector<1x8x32xf32>
    %c0_103 = arith.constant 0 : index
    %c0_104 = arith.constant 0 : index
    %c0_105 = arith.constant 0 : index
    %125 = vector.load %arg5[%c0_103, %c0_104, %c0_105] : memref<1x8x32xf32, #tpu.memory_space<vmem>>, vector<1x8x32xf32>
    tpu.vector_store %arg5[%c0_103, %c0_104, %c0_105], %124 {strides = array<i32>} : memref<1x8x32xf32, #tpu.memory_space<vmem>>, vector<1x8x32xf32>,
    return
  }
  func.func @transform_0(%arg0: i32, %arg1: i32) -> (i32, i32, i32, i32) {
    %c0_i32 = arith.constant 0 : i32
    %c0_i32_0 = arith.constant 0 : i32
    %c0_i32_1 = arith.constant 0 : i32
    return %arg0, %c0_i32, %arg1, %c0_i32_0 : i32, i32, i32, i32
  }
  func.func @transform_1(%arg0: i32, %arg1: i32) -> (i32, i32, i32) {
    %c0_i32 = arith.constant 0 : i32
    %c0_i32_0 = arith.constant 0 : i32
    %c0_i32_1 = arith.constant 0 : i32
    %c0_i32_2 = arith.constant 0 : i32
    return %c0_i32, %c0_i32_0, %c0_i32_1 : i32, i32, i32
  }
  func.func @transform_2(%arg0: i32, %arg1: i32) -> (i32, i32) {
    %c0_i32 = arith.constant 0 : i32
    %c0_i32_0 = arith.constant 0 : i32
    return %arg1, %c0_i32 : i32, i32
  }
  func.func @transform_3(%arg0: i32, %arg1: i32) -> (i32, i32, i32) {
    %c0_i32 = arith.constant 0 : i32
    %c0_i32_0 = arith.constant 0 : i32
    return %arg0, %arg1, %c0_i32 : i32, i32, i32
  }
}

</mosaic_0001>

<bundles_post_ra>
// kernel: tpu_custom_call.1
= control target key start
LH: loop header
LB: loop body
LE: loop exit
PB: predicated region body
PF: predicated region fallthrough
CT: control target
= control target key end

     0   :  { %8 = vsyncpa [#allocation3], 0  ;;  %s2343_s0 = inlined_call_operand.vmem [shape: f32[2,19,8,64], index: 0, kind: input, shape index: {}]   ;;  %s2344_s1 = inlined_call_operand.vmem [shape: bf16[10,128,32], index: 1, kind: input, shape index: {}]   ;;  %s2345_s2 = inlined_call_operand.vmem [shape: f32[8,32], index: 2, kind: input, shape index: {}]   ;;  %s2346_s3 = inlined_call_operand.hbm [shape: f32[2,8,32], index: 3, kind: output, shape index: {}]  }
   0x1   :  { %10 = vsyncpa [#allocation3 + $0x1], 0  ;;  %s1963_s12 = smov 0   ;;  %s1965_s13 = smov 0  }
   0x2   :  { %s1967_s14 = smov 0   ;;  %s1969_s15 = smov 0  }
   0x3   :  { %s1971_s16 = smov 0   ;;  %s1973_s17 = smov 0  }
   0x4 LB: > { %s1206_s18 = sadd.s32 4294967295, %s1940_s17   ;;  %s1207_s19 = sadd.s32 4294967294, %s1940_s17   ;;  %s1940_s17 = sphi %s1973_s17, %s16_s17   ;;  %s1936_s16 = sphi %s1971_s16, %s2353_s16   ;;  %s1932_s15 = sphi %s1969_s15, %s2352_s15   ;;  %s1928_s14 = sphi %s1967_s14, %s2351_s14   ;;  %s1924_s13 = sphi %s1965_s13, %s2350_s13   ;;  %s1920_s12 = sphi %s1963_s12, %s2349_s12  }
   0x5   : > { %s28_s20 = sadd.s32 1, %s1936_s16  ;;  %s112_s21 = sadd.s32 1, %s1928_s14 }
   0x6   : > { %p30_p0 = scmp.ge.s32.totalorder %s28_s20, 2  ;;  %p122_p1 = scmp.ne.s32.totalorder %s1928_s14, %s1924_s13 }
   0x7   : > { %p123_p2 = scmp.eq.s32.totalorder %s1206_s18, 1  ;;  %p128_p3 = scmp.ne.s32.totalorder %s1924_s13, %s1920_s12 }
   0x8   : > { %s2355_s20 = smov (%p30_p0, %s28_s20), 0  ;;  %p129_p5 = scmp.eq.s32.totalorder %s1207_s19, 1 }
   0x9   : > { %p2003_p4 = por %p123_p2, %p122_p1  ;;  %s107_s23 = ssub.s32 %s1936_s16, %s2355_s20 }
   0xa   : > { %p1211_p6 = scmp.ge.s32.totalorder %s1940_s17, 1  ;;  %p110_p7 = scmp.eq.s32.totalorder %s107_s23, 0 }
   0xb   : > { %p2010_p8 = por %p129_p5, %p128_p3  ;;  %p168_p9 = scmp.lt.s32.totalorder %s1940_s17, 3 }
   0xc   : > { %s2016_s25 = scalar_select %p110_p7, %s1928_s14, %s112_s21  }
   0xd   : > { %p169_p10 = pnand %p1211_p6, %p168_p9 }
   0xe   : > { %p199_p11 = scmp.lt.s32.totalorder (!%p169_p10), %s1932_s15, 1  ;;  %s1942_s7 = smov (!%p169_p10), 64  }
   0xf   : > { %172 = sbr.rel (%p169_p10) target bundleno = 317 (0x13d), region = 32  ;;  %s1697_s5 = sshll.u32 (!%p169_p10), %s1932_s15, 3 }
  0x10   : > { %s1112_s9 = scalar_lea.hbm (!%p169_p10), %s2346_s3, %s1697_s5 }
  0x11   : > { %s1116_s21 = sshll.u32 (!%p169_p10), %s1112_s9, 4  ;;  %s1117_s21 = int_to_ptr.hbm [resolvable:$true] %s1116_s21 }
  0x12   : > { %s1876_s26 = sshra.s32 (!%p169_p10), %s1117_s21, 4  ;;  %s1877_s26 = int_to_ptr.hbm [resolvable:$true] %s1876_s26 }
  0x13   : > { %s1878_s27 = scalar_lea.hbm (!%p169_p10), %s1877_s26, 8  ;;  %p1883_p1 = scmp.lt.s32.totalorder (!%p169_p10), %s1877_s26, %s2346_s3 }
  0x14   : > { %v1715_v0 = vld [vmem:[%s2344_s1 + $0x78] sm:$0xff]  ;;  %s200_s30 = scalar_select %p199_p11, %s1932_s15, 1  ;;  %v1714_v2 = vld [vmem:[%s2344_s1 + $0x70] sm:$0xff]  ;;  %v1713_v6 = vld [vmem:[%s2344_s1 + $0x68] sm:$0xff]  ;;  %vm218_vm0 = vcmask 523264   ;;  %vm1098_vm1 = vcmask 261120  }
  0x15   : > { %v1707_v1 = vld [vmem:[%s2344_s1 + $0x38] sm:$0xff]  ;;  %312 = vmatpush.bf16.msra.mxu0 %v1715_v0  ;;  %v1706_v3 = vld [vmem:[%s2344_s1 + $0x30] sm:$0xff]  ;;  %v1705_v7 = vld [vmem:[%s2344_s1 + $0x28] sm:$0xff]  ;;  %p1879_p12 = scmp.ne.s32.totalorder %s1877_s26, %s1878_s27 }
  0x16   : > { %373 = vmatpush.bf16.msra.mxu1 %v1707_v1  ;;  %s1780_s8 = smul.u32 152, %s200_s30  ;;  %v1723_v4 = vld [vmem:[%s2344_s1 + $0xb8] sm:$0xff]  ;;  %v1722_v10 = vld [vmem:[%s2344_s1 + $0xb0] sm:$0xff]  ;;  %v1712_v18 = vld [vmem:[%s2344_s1 + $0x60] sm:$0xff] }
  0x17   : > { %v1731_v5 = vld [vmem:[%s2344_s1 + $0xf8] sm:$0xff]  ;;  %461 = vmatpush.bf16.msra.mxu2 %v1723_v4  ;;  %v1730_v14 = vld [vmem:[%s2344_s1 + $0xf0] sm:$0xff]  ;;  %v1704_v19 = vld [vmem:[%s2344_s1 + $0x20] sm:$0xff]  ;;  %p1880_p13 = pnand %p1879_p12, %p2003_p4 }
  0x18   : > { %s2041_s23 = scalar_lea.vmem %s2343_s0, %s1780_s8  ;;  %550 = vmatpush.bf16.msra.mxu3 %v1731_v5  ;;  %v1721_v23 = vld [vmem:[%s2344_s1 + $0xa8] sm:$0xff]  ;;  %v1711_v28 = vld [vmem:[%s2344_s1 + $0x58] sm:$0xff]  ;;  %v1720_v31 = vld [vmem:[%s2344_s1 + $0xa0] sm:$0xff] }
  0x19   : > { %313 = vmatpush.bf16.msra.mxu0 %v1714_v2  ;;  %v1214_v8 = vld [vmem:[%s2041_s23 + $0x8] sm:$0xff]  ;;  %v1216_v9 = vld [vmem:[%s2041_s23 + $0x18] sm:$0xff]  ;;  %v2062_v17 = vld [vmem:[%s2041_s23 + $0x90] sm:$0xff]  ;;  %p1881_p0 = pneg %p1880_p13 }
  0x1a   : > { %374 = vmatpush.bf16.msra.mxu1 %v1706_v3  ;;  %v1837_v11 = vpack.i.bf16 %v1216_v9, %v1214_v8  ;;  %v1398_v12 = vld [vmem:[%s2041_s23 + $0x48] sm:$0xff]  ;;  %v1448_v13 = vld [vmem:[%s2041_s23 + $0x58] sm:$0xff]  ;;  %v1728_v32 = vld [vmem:[%s2344_s1 + $0xe0] sm:$0xff] }
  0x1b   : > { %v1847_v15 = vpack.i.bf16 %v1448_v13, %v1398_v12  ;;  %v1598_v16 = vld [vmem:[%s2041_s23 + $0x88] sm:$0xff]  ;;  %v1348_v21 = vld [vmem:[%s2041_s23 + $0x38] sm:$0xff]  ;;  %462 = vmatpush.bf16.msra.mxu2 %v1722_v10  ;;  %v1710_v33 = vld [vmem:[%s2344_s1 + $0x50] sm:$0xff] }
  0x1c   : > { %1838 = vrot.lane.b32.xlu0 %v1837_v11, %s1942_s7  ;;  %v1298_v20 = vld [vmem:[%s2041_s23 + $0x28] sm:$0xff]  ;;  %v1857_v22 = vpack.i.bf16 %v2062_v17, %v1598_v16  ;;  %v1548_v25 = vld [vmem:[%s2041_s23 + $0x78] sm:$0xff]  ;;  %551 = vmatpush.bf16.msra.mxu3 %v1730_v14  ;;  %v1702_v34 = vld [vmem:[%s2344_s1 + $0x10] sm:$0xff] }
  0x1d   : > { %314 = vmatpush.bf16.msra.mxu0 %v1713_v6  ;;  %1848 = vrot.lane.b32.xlu1 %v1847_v15, %s1942_s7  ;;  %v1498_v24 = vld [vmem:[%s2041_s23 + $0x68] sm:$0xff]  ;;  %v1842_v27 = vpack.i.bf16 %v1348_v21, %v1298_v20  ;;  %v1703_v30 = vld [vmem:[%s2344_s1 + $0x18] sm:$0xff]  ;;  %v1718_v39 = vld [vmem:[%s2344_s1 + $0x90] sm:$0xff] }
  0x1e   : > { %375 = vmatpush.bf16.msra.mxu1 %v1705_v7  ;;  %v1729_v26 = vld [vmem:[%s2344_s1 + $0xe8] sm:$0xff]  ;;  %1858 = vrot.lane.b32.xlu2 %v1857_v22, %s1942_s7  ;;  %v1852_v29 = vpack.i.bf16 %v1548_v25, %v1498_v24  ;;  %v1719_v35 = vld [vmem:[%s2344_s1 + $0x98] sm:$0xff]  ;;  %v1726_v40 = vld [vmem:[%s2344_s1 + $0xd0] sm:$0xff] }
  0x1f   : > { %463 = vmatpush.bf16.msra.mxu2 %v1721_v23  ;;  %v1727_v36 = vld [vmem:[%s2344_s1 + $0xd8] sm:$0xff]  ;;  %v1709_v37 = vld [vmem:[%s2344_s1 + $0x48] sm:$0xff]  ;;  %v1708_v41 = vld [vmem:[%s2344_s1 + $0x40] sm:$0xff] }
  0x20   : > { %552 = vmatpush.bf16.msra.mxu3 %v1729_v26  ;;  %v1701_v38 = vld [vmem:[%s2344_s1 + $0x8] sm:$0xff]  ;;  %v1700_v42 = vld [vmem:[%s2344_s1] sm:$0xff]  ;;  %v1739_v43 = vld [vmem:[%s2344_s1 + $0x138] sm:$0xff] }
  0x21   : > { %315 = vmatpush.bf16.msra.mxu0 %v1712_v18  ;;  %v1747_v44 = vld [vmem:[%s2344_s1 + $0x178] sm:$0xff]  ;;  %v1717_v45 = vld [vmem:[%s2344_s1 + $0x88] sm:$0xff]  ;;  %v1738_v47 = vld [vmem:[%s2344_s1 + $0x130] sm:$0xff] }
  0x22   : > { %376 = vmatpush.bf16.msra.mxu1 %v1704_v19  ;;  %v1725_v46 = vld [vmem:[%s2344_s1 + $0xc8] sm:$0xff]  ;;  %v1746_v48 = vld [vmem:[%s2344_s1 + $0x170] sm:$0xff]  ;;  %v1716_v49 = vld [vmem:[%s2344_s1 + $0x80] sm:$0xff] }
  0x23   : > { %464 = vmatpush.bf16.msra.mxu2 %v1720_v31  ;;  %v1724_v50 = vld [vmem:[%s2344_s1 + $0xc0] sm:$0xff]  ;;  %v1755_v51 = vld [vmem:[%s2344_s1 + $0x1b8] sm:$0xff]  ;;  %v1737_v53 = vld [vmem:[%s2344_s1 + $0x128] sm:$0xff] }
  0x24   : > { %1843 = vrot.lane.b32.xlu0 %v1842_v27, %s1942_s7  ;;  %553 = vmatpush.bf16.msra.mxu3 %v1728_v32  ;;  %v1763_v52 = vld [vmem:[%s2344_s1 + $0x1f8] sm:$0xff]  ;;  %v1745_v54 = vld [vmem:[%s2344_s1 + $0x168] sm:$0xff]  ;;  %v1736_v55 = vld [vmem:[%s2344_s1 + $0x120] sm:$0xff] }
  0x25   : > { %316 = vmatpush.bf16.msra.mxu0 %v1711_v28  ;;  %1853 = vrot.lane.b32.xlu1 %v1852_v29, %s1942_s7  ;;  %v1744_v56 = vld [vmem:[%s2344_s1 + $0x160] sm:$0xff]  ;;  %v1735_v57 = vld [vmem:[%s2344_s1 + $0x118] sm:$0xff]  ;;  %v1734_v59 = vld [vmem:[%s2344_s1 + $0x110] sm:$0xff]  ;;  %s1882_s7 = scalar_lea.hbm %s2346_s3, 16 }
  0x26   : > { %377 = vmatpush.bf16.msra.mxu1 %v1703_v30  ;;  %v1743_v58 = vld [vmem:[%s2344_s1 + $0x158] sm:$0xff]  ;;  %v1742_v60 = vld [vmem:[%s2344_s1 + $0x150] sm:$0xff]  ;;  %v1733_v61 = vld [vmem:[%s2344_s1 + $0x108] sm:$0xff]  ;;  %p1884_p2 = scmp.lt.s32.totalorder %s1882_s7, %s1878_s27 }
  0x27   : > { %465 = vmatpush.bf16.msra.mxu2 %v1719_v35  ;;  %v1741_v62 = vld [vmem:[%s2344_s1 + $0x148] sm:$0xff]  ;;  %v1754_v63 = vld [vmem:[%s2344_s1 + $0x1b0] sm:$0xff]  ;;  %v1732_v1 = vld [vmem:[%s2344_s1 + $0x100] sm:$0xff] }
  0x28   : > { %554 = vmatpush.bf16.msra.mxu3 %v1727_v36  ;;  %v1762_v0 = vld [vmem:[%s2344_s1 + $0x1f0] sm:$0xff]  ;;  %v1740_v2 = vld [vmem:[%s2344_s1 + $0x140] sm:$0xff]  ;;  %v1753_v3 = vld [vmem:[%s2344_s1 + $0x1a8] sm:$0xff]  ;;  %p1885_p3 = por %p1884_p2, %p1883_p1 }
  0x29   : > { %317 = vmatpush.bf16.msra.mxu0 %v1710_v33  ;;  %v1761_v4 = vld [vmem:[%s2344_s1 + $0x1e8] sm:$0xff]  ;;  %v1752_v5 = vld [vmem:[%s2344_s1 + $0x1a0] sm:$0xff]  ;;  %v1751_v7 = vld [vmem:[%s2344_s1 + $0x198] sm:$0xff] }
  0x2a   : > { %378 = vmatpush.bf16.msra.mxu1 %v1702_v34  ;;  %v1760_v6 = vld [vmem:[%s2344_s1 + $0x1e0] sm:$0xff]  ;;  %v1759_v8 = vld [vmem:[%s2344_s1 + $0x1d8] sm:$0xff]  ;;  %v1750_v9 = vld [vmem:[%s2344_s1 + $0x190] sm:$0xff]  ;;  %p1886_p5 = pnand %p1885_p3, %p1881_p0 }
  0x2b   : > { %466 = vmatpush.bf16.msra.mxu2 %v1718_v39  ;;  %v1758_v10 = vld [vmem:[%s2344_s1 + $0x1d0] sm:$0xff]  ;;  %v1749_v11 = vld [vmem:[%s2344_s1 + $0x188] sm:$0xff]  ;;  %v1748_v13 = vld [vmem:[%s2344_s1 + $0x180] sm:$0xff] }
  0x2c   : > { %555 = vmatpush.bf16.msra.mxu3 %v1726_v40  ;;  %v1757_v12 = vld [vmem:[%s2344_s1 + $0x1c8] sm:$0xff]  ;;  %v1756_v14 = vld [vmem:[%s2344_s1 + $0x1c0] sm:$0xff]  ;;  %v1215_v16 = vld [vmem:[%s2041_s23 + $0x10] sm:$0xff] }
  0x2d   : > { %318 = vmatpush.bf16.msra.mxu0 %v1709_v37  ;;  %v211_v18 = vld [vmem:[%s2041_s23] sm:$0xff]  ;;  %v1771_v23 = vld [vmem:[%s2344_s1 + $0x238] sm:$0xff]  ;;  %v1770_v28 = vld [vmem:[%s2344_s1 + $0x230] sm:$0xff] }
  0x2e   : > { %379 = vmatpush.bf16.msra.mxu1 %v1701_v38  ;;  %v1779_v24 = vld [vmem:[%s2344_s1 + $0x278] sm:$0xff]  ;;  %v1778_v29 = vld [vmem:[%s2344_s1 + $0x270] sm:$0xff]  ;;  %v1297_v31 = vld [vmem:[%s2041_s23 + $0x20] sm:$0xff] }
  0x2f   : > { %467 = vmatpush.bf16.msra.mxu2 %v1717_v45  ;;  %v1347_v32 = vld [vmem:[%s2041_s23 + $0x30] sm:$0xff]  ;;  %v1769_v37 = vld [vmem:[%s2344_s1 + $0x228] sm:$0xff]  ;;  %v1768_v45 = vld [vmem:[%s2344_s1 + $0x220] sm:$0xff] }
  0x30   : > { %556 = vmatpush.bf16.msra.mxu3 %v1725_v46  ;;  %v1777_v38 = vld [vmem:[%s2344_s1 + $0x268] sm:$0xff]  ;;  %v1776_v46 = vld [vmem:[%s2344_s1 + $0x260] sm:$0xff] }
  0x31   : > { %319 = vmatpush.bf16.msra.mxu0 %v1708_v41 }
  0x32   : > { %380 = vmatpush.bf16.msra.mxu1 %v1700_v42 }
  0x33   : > { %468 = vmatpush.bf16.msra.mxu2 %v1716_v49 }
  0x34   : > { %557 = vmatpush.bf16.msra.mxu3 %v1724_v50 }
  0x35   : > { %639 = vmatpush.bf16.msrb.mxu0 %v1739_v43  ;;  %v1397_v43 = vld [vmem:[%s2041_s23 + $0x40] sm:$0xff] }
  0x36   : > { %728 = vmatpush.bf16.msrb.mxu1 %v1747_v44  ;;  %v1447_v44 = vld [vmem:[%s2041_s23 + $0x50] sm:$0xff] }
  0x37   : > { %817 = vmatpush.bf16.msrb.mxu2 %v1755_v51 }
  0x38   : > { %906 = vmatpush.bf16.msrb.mxu3 %v1763_v52  ;;  %v1767_v52 = vld [vmem:[%s2344_s1 + $0x218] sm:$0xff] }
  0x39   : > { %640 = vmatpush.bf16.msrb.mxu0 %v1738_v47 }
  0x3a   : > { %729 = vmatpush.bf16.msrb.mxu1 %v1746_v48 }
  0x3b   : > { %818 = vmatpush.bf16.msrb.mxu2 %v1754_v63 }
  0x3c   : > { %907 = vmatpush.bf16.msrb.mxu3 %v1762_v0 }
  0x3d   : > { %641 = vmatpush.bf16.msrb.mxu0 %v1737_v53  ;;  %v1775_v53 = vld [vmem:[%s2344_s1 + $0x258] sm:$0xff] }
  0x3e   : > { %730 = vmatpush.bf16.msrb.mxu1 %v1745_v54 }
  0x3f   : > { %819 = vmatpush.bf16.msrb.mxu2 %v1753_v3 }
  0x40   : > { %908 = vmatpush.bf16.msrb.mxu3 %v1761_v4 }
  0x41   : > { %642 = vmatpush.bf16.msrb.mxu0 %v1736_v55 }
  0x42   : > { %731 = vmatpush.bf16.msrb.mxu1 %v1744_v56  ;;  %v1497_v56 = vld [vmem:[%s2041_s23 + $0x60] sm:$0xff] }
  0x43   : > { %820 = vmatpush.bf16.msrb.mxu2 %v1752_v5  ;;  %v1597_v5 = vld [vmem:[%s2041_s23 + $0x80] sm:$0xff] }
  0x44   : > { %909 = vmatpush.bf16.msrb.mxu3 %v1760_v6 }
  0x45   : > { %643 = vmatpush.bf16.msrb.mxu0 %v1735_v57  ;;  %v1547_v57 = vld [vmem:[%s2041_s23 + $0x70] sm:$0xff]  ;;  %s196_s23 = sand.u32 1, %s1924_s13  }
  0x46   : > { %732 = vmatpush.bf16.msrb.mxu1 %v1743_v58  ;;  %v1766_v58 = vld [vmem:[%s2344_s1 + $0x210] sm:$0xff]  ;;  %s1212_s4 = sshll.u32 %s196_s23, 3  ;;  %s1101_s15 = scalar_lea.sflag [#allocation3], %s196_s23 }
  0x47   : > { %821 = vmatpush.bf16.msrb.mxu2 %v1751_v7  ;;  %s198_s18 = scalar_lea.vmem [#allocation2], %s1212_s4 }
  0x48   : > { %910 = vmatpush.bf16.msrb.mxu3 %v1759_v8  ;;  %v1764_v8 = vld [vmem:[%s2344_s1 + $0x200] sm:$0xff]  ;;  %s1114_s19 = sshll.u32 %s198_s18, 4  ;;  %s1115_s19 = int_to_ptr.vmem [resolvable:$true] %s1114_s19 }
  0x49   : > { %644 = vmatpush.bf16.msrb.mxu0 %v1734_v59  ;;  %v1774_v59 = vld [vmem:[%s2344_s1 + $0x250] sm:$0xff] }
  0x4a   : > { %733 = vmatpush.bf16.msrb.mxu1 %v1742_v60 }
  0x4b   : > { %822 = vmatpush.bf16.msrb.mxu2 %v1750_v9  ;;  %v1772_v9 = vld [vmem:[%s2344_s1 + $0x240] sm:$0xff] }
  0x4c   : > { %911 = vmatpush.bf16.msrb.mxu3 %v1758_v10 }
  0x4d   : > { %645 = vmatpush.bf16.msrb.mxu0 %v1733_v61 }
  0x4e   : > { %734 = vmatpush.bf16.msrb.mxu1 %v1741_v62 }
  0x4f   : > { %823 = vmatpush.bf16.msrb.mxu2 %v1749_v11 }
  0x50   : > { %912 = vmatpush.bf16.msrb.mxu3 %v1757_v12 }
  0x51   : > { %646 = vmatpush.bf16.msrb.mxu0 %v1732_v1  ;;  %v1765_v1 = vld [vmem:[%s2344_s1 + $0x208] sm:$0xff] }
  0x52   : > { %735 = vmatpush.bf16.msrb.mxu1 %v1740_v2  ;;  %v1773_v2 = vld [vmem:[%s2344_s1 + $0x248] sm:$0xff] }
  0x53   : > { %824 = vmatpush.bf16.msrb.mxu2 %v1748_v13 }
  0x54   : > { %913 = vmatpush.bf16.msrb.mxu3 %v1756_v14 }
  0x78   : > { %v1859_v62 = vpop.permute.xlu2 %1858 }
  0x79   : > { %v1861_v3 = vunpack.i.h.bf16 %v1859_v62  ;;  %v1860_v4 = vunpack.i.l.bf16 %v1859_v62 }
  0x7b   : > { %v1015_v6 = vsel %vm218_vm0, %v2062_v17, %v1861_v3  ;;  %v928_v7 = vsel %vm218_vm0, %v1597_v5, %v1860_v4 }
  0x7c   : > { %v1016_v10 = vpack.c.bf16 %v1015_v6, %v1015_v6  ;;  %v929_v11 = vpack.c.bf16 %v928_v7, %v928_v7 }
  0x8e   : > { %v1839_v15 = vpop.permute.xlu0 %1838 }
  0x8f   : > { %v1841_v19 = vunpack.i.h.bf16 %v1839_v15  ;;  %v1840_v20 = vunpack.i.l.bf16 %v1839_v15  ;;  %v1849_v27 = vpop.permute.xlu1 %1848 }
  0x90   : > { %v1851_v39 = vunpack.i.h.bf16 %v1849_v27  ;;  %v1850_v40 = vunpack.i.l.bf16 %v1849_v27 }
  0x91   : > { %v245_v21 = vsel %vm218_vm0, %v1215_v16, %v1841_v19  ;;  %v219_v22 = vsel %vm218_vm0, %v211_v18, %v1840_v20 }
  0x92   : > { %v246_v25 = vpack.c.bf16 %v245_v21, %v245_v21  ;;  %v220_v26 = vpack.c.bf16 %v219_v22, %v219_v22  ;;  %v572_v47 = vsel %vm218_vm0, %v1397_v43, %v1850_v40  ;;  %v661_v48 = vsel %vm218_vm0, %v1447_v44, %v1851_v39 }
  0x93   : > { %v573_v50 = vpack.c.bf16 %v572_v47, %v572_v47  ;;  %v662_v51 = vpack.c.bf16 %v661_v48, %v661_v48 }
  0x94   : > { %320 = vmatmul.bf16.vlgmr.msra.gmra.mxu0 %v246_v25  ;;  %381 = vmatmul.bf16.vlgmr.msra.gmra.mxu1 %v220_v26 }
  0x95   : > { %995 = vmatpush.bf16.msra.mxu0 %v1771_v23  ;;  %1082 = vmatpush.bf16.msra.mxu1 %v1779_v24 }
  0x96   : > { %v1844_v30 = vpop.permute.xlu0 %1843 }
  0x97   : > { %v1846_v33 = vunpack.i.h.bf16 %v1844_v30  ;;  %v1845_v34 = vunpack.i.l.bf16 %v1844_v30  ;;  %v1854_v49 = vpop.permute.xlu1 %1853 }
  0x98   : > { %v1856_v54 = vunpack.i.h.bf16 %v1854_v49  ;;  %v1855_v55 = vunpack.i.l.bf16 %v1854_v49 }
  0x99   : > { %996 = vmatpush.bf16.msra.mxu0 %v1770_v28  ;;  %1083 = vmatpush.bf16.msra.mxu1 %v1778_v29  ;;  %v394_v35 = vsel %vm218_vm0, %v1297_v31, %v1845_v34  ;;  %v483_v36 = vsel %vm218_vm0, %v1347_v32, %v1846_v33 }
  0x9a   : > { %v395_v41 = vpack.c.bf16 %v394_v35, %v394_v35  ;;  %v484_v42 = vpack.c.bf16 %v483_v36, %v483_v36  ;;  %v750_v60 = vsel %vm218_vm0, %v1497_v56, %v1855_v55  ;;  %v839_v61 = vsel %vm218_vm0, %v1547_v57, %v1856_v54  ;;  %v1096_v36 = vld [vmem:[%s2345_s2] sm:$0xff] }
  0x9b   : > { %v751_v63 = vpack.c.bf16 %v750_v60, %v750_v60  ;;  %v840_v0 = vpack.c.bf16 %v839_v61, %v839_v61 }
  0x9c   : > { %469 = vmatmul.bf16.vlgmr.msra.gmra.mxu2 %v395_v41  ;;  %558 = vmatmul.bf16.vlgmr.msra.gmra.mxu3 %v484_v42 }
  0x9d   : > { %997 = vmatpush.bf16.msra.mxu0 %v1769_v37  ;;  %1084 = vmatpush.bf16.msra.mxu1 %v1777_v38 }
  0xa1   : > { %998 = vmatpush.bf16.msra.mxu0 %v1768_v45  ;;  %1085 = vmatpush.bf16.msra.mxu1 %v1776_v46 }
  0xa4   : > { %647 = vmatmul.bf16.vlgmr.msrb.gmra.mxu0 %v573_v50  ;;  %736 = vmatmul.bf16.vlgmr.msrb.gmra.mxu1 %v662_v51 }
  0xa5   : > { %999 = vmatpush.bf16.msra.mxu0 %v1767_v52  ;;  %1086 = vmatpush.bf16.msra.mxu1 %v1775_v53 }
  0xa9   : > { %1000 = vmatpush.bf16.msra.mxu0 %v1766_v58  ;;  %1087 = vmatpush.bf16.msra.mxu1 %v1774_v59 }
  0xac   : > { %825 = vmatmul.bf16.vlgmr.msrb.gmra.mxu2 %v751_v63  ;;  %914 = vmatmul.bf16.vlgmr.msrb.gmra.mxu3 %v840_v0 }
  0xad   : > { %1001 = vmatpush.bf16.msra.mxu0 %v1765_v1  ;;  %1088 = vmatpush.bf16.msra.mxu1 %v1773_v2 }
  0xb1   : > { %1002 = vmatpush.bf16.msra.mxu0 %v1764_v8  ;;  %1089 = vmatpush.bf16.msra.mxu1 %v1772_v9 }
  0xb4   : > { %1003 = vmatmul.bf16.vlgmr.msra.gmra.mxu0 %v929_v11  ;;  %1090 = vmatmul.bf16.vlgmr.msra.gmra.mxu1 %v1016_v10 }
 0x111   : > { %v321_v12 = vpop.f32.mrf.mxu0  ;;  %v382_v13 = vpop.f32.mrf.mxu1 }
 0x112   : > { %v383_v18 = vadd.f32 %v382_v13, %v321_v12 }
 0x119   : > { %v323_v17 = vpop.f32.mrf.mxu0  ;;  %v384_v14 = vpop.f32.mrf.mxu1 }
 0x11f   : > { %v470_v15 = vpop.f32.mrf.mxu2  ;;  %v559_v16 = vpop.f32.mrf.mxu3 }
 0x120   : > { %v474_v21 = vadd.f32 %v470_v15, %v383_v18 }
 0x121   : > { %v648_v19 = vpop.f32.mrf.mxu0  ;;  %v737_v20 = vpop.f32.mrf.mxu1 }
 0x122   : > { %v563_v22 = vadd.f32 %v559_v16, %v474_v21 }
 0x124   : > { %v652_v27 = vadd.f32 %v648_v19, %v563_v22 }
 0x126   : > { %v741_v28 = vadd.f32 %v737_v20, %v652_v27 }
 0x127   : > { %v472_v23 = vpop.f32.mrf.mxu2  ;;  %v561_v24 = vpop.f32.mrf.mxu3 }
 0x129   : > { %v650_v25 = vpop.f32.mrf.mxu0  ;;  %v739_v26 = vpop.f32.mrf.mxu1 }
 0x12f   : > { %v826_v29 = vpop.f32.mrf.mxu2  ;;  %v915_v30 = vpop.f32.mrf.mxu3 }
 0x130   : > { %v830_v31 = vadd.f32 %v826_v29, %v741_v28 }
 0x131   : > { %v1004_v32 = vpop.f32.mrf.mxu0  ;;  %v1091_v33 = vpop.f32.mrf.mxu1 }
 0x132   : > { %v919_v34 = vadd.f32 %v915_v30, %v830_v31 }
 0x134   : > { %v1008_v35 = vadd.f32 %v1004_v32, %v919_v34 }
 0x136   : > { %v1095_v37 = vadd.f32 %v1091_v33, %v1008_v35 }
 0x137   : > { %v828_v38 = vpop.f32.mrf.mxu2  ;;  %v917_v39 = vpop.f32.mrf.mxu3 }
 0x138   : > { %v1097_v40 = vadd.f32 %v1096_v36, %v1095_v37 }
 0x139   : > { %v1006_v41 = vpop.f32.mrf.mxu0  ;;  %v1093_v42 = vpop.f32.mrf.mxu1 }
 0x13a   : > { %1099 = vst.msk [vmem:[%s198_s18] sm:$0xff] %vm1098_vm1, %v1097_v40 }
 0x13b   : > { %1889 = shalt.err (!%p1886_p5)
}
 0x13c   : > { %1781 = dma.vmem_to_hbm [thread:$0]  (%p2003_p4), %s1115_s19, 128, %s1117_s21, %s1101_s15  }
 0x13d PF: > { %p1787_p6 = scmp.ge.s32.totalorder %s1940_s17, 2  ;;  %s1128_s23 = sand.u32 1, %s1920_s12  }
 0x13e   : > { %s1129_s5 = scalar_lea.sflag [#allocation3], %s1128_s23 }
 0x13f   : > { %p1784_p7 = pnand %p1787_p6, %p2010_p8 }
 0x141   : > { %p1785_p9 = pneg %p1784_p7 }
 0x143   : > { %1915 = dma.done.wait (%p1785_p9), %s1129_s5, 128  }
 0x144   : > { %1917 = vsyncadd (%p1785_p9), %s1129_s5, 4294967168  ;;  %s16_s17 = sadd.s32 1, %s1940_s17   ;;  %s2349_s12 = smov %s1924_s13 }
 0x145   : > { %p13_p10 = scmp.ge.s32.totalorder %s16_s17, 4   ;;  %s2350_s13 = smov %s1928_s14 }
 0x146   : > { %s2351_s14 = smov %s2016_s25  ;;  %s2352_s15 = smov %s1936_s16 }
 0x147   : > { %s2353_s16 = smov %s2355_s20  ;;  %15 = sbr.rel (!%p13_p10) target bundleno = 4 (0x4), region = 97 }
 0x14c   :  { %1135 = vsyncpa [#allocation3], 1 }
 0x14d   :  { %1137 = vsyncpa [#allocation3 + $0x1], 1 }

</bundles_post_ra>
